<compile_context>
chip_gen: v5e
topology: v5e:2x2
jax: 0.10.0
libtpu: 0.0.40
codegen_flags: <defaults>
</compile_context>

<pallas_src>
import jax
import jax.numpy as jnp
from jax.experimental import pallas as pl
from jax.experimental.pallas import tpu as pltpu


def _round_up(v, m):
    return ((v + m - 1) // m) * m


def network01_kernel(x_ref, w123_ref, b123_ref, w4_ref, b4_ref, w5_ref,
                     b5_ref, o_ref):
    f32 = jnp.float32
    cdt = b123_ref.dtype                      # pool-chain compute dtype

    # fused fc1->fc2->fc3 on the MXU: [128,15] @ [15,T]  (batch on lanes).
    # Hidden units are pre-permuted (wrapper) so phase group p = hidden indices
    # {8t+p : t=0..14} occupies sublanes [16p, 16p+14]; sublane 16p+15 is zero.
    h = jnp.dot(w123_ref[...], x_ref[...], preferred_element_type=f32)
    h = h.astype(cdt) + b123_ref[...]
    h = jnp.maximum(h, 0.0)                   # relu (later relus are identities)

    # max_pool(2) -> max_pool(2) -> avg_pool(2) over features collapse to
    # aligned sublane-slice max/adds (no rolls / shift matmuls / relayouts):
    #   pooled[t] = 0.5*(max_{p<4} relu(h[8t+p]) + max_{p>=4} relu(h[8t+p]))
    # the 0.5 is folded into the fc4 weights.
    m_a = jnp.maximum(jnp.maximum(h[0:16], h[16:32]),
                      jnp.maximum(h[32:48], h[48:64]))
    m_b = jnp.maximum(jnp.maximum(h[64:80], h[80:96]),
                      jnp.maximum(h[96:112], h[112:128]))
    a = m_a + m_b                             # [16,T]; rows 0..14 = 2*pooled

    # fc4 (0.5 folded in; even outputs -> rows 0..3, odd outputs -> rows 8..11
    # so the last max-pool is again an aligned slice max).
    h4 = jnp.dot(w4_ref[...], a, preferred_element_type=f32) + b4_ref[...]
    h4 = jnp.maximum(h4, 0.0)                 # relu before the last pool
    p4 = jnp.maximum(h4[0:8], h4[8:16])       # [8,T]; rows 0..3 = pooled values

    # fc5 on the MXU (row 0 of the 8x8 weight holds w5), then the final relu.
    out = jnp.dot(w5_ref[...], p4, preferred_element_type=f32)[0:1, :]
    out = out + b5_ref[...]
    o_ref[...] = jnp.maximum(out, 0.0).astype(o_ref.dtype)   # lane-dense [1,T]


def make_params(key):
    """Deterministic init, shapes as in Network01.__init__ (stored as [in, out])."""
    def linear(key, fan_in, fan_out):
        kw, kb = jax.random.split(key)
        bound = 1.0 / jnp.sqrt(fan_in)
        w = jax.random.uniform(kw, (fan_in, fan_out), jnp.float32, -bound, bound)
        b = jax.random.uniform(kb, (fan_out,), jnp.float32, -bound, bound)
        return w, b

    k1, k2, k3, k4, k5 = jax.random.split(key, 5)
    w1, b1 = linear(k1, 15, 30)
    w2, b2 = linear(k2, 30, 60)
    w3, b3 = linear(k3, 60, 120)
    w4, b4 = linear(k4, 15, 8)
    w5, b5 = linear(k5, 4, 1)        # out_dim = 1 (as used by the module's squeeze())
    return (w1, b1, w2, b2, w3, b3, w4, b4, w5, b5)


def network01_pallas(x, params, *, tile_n=4096, pool_dtype=jnp.float32):
    """Network01 forward as a single Pallas TPU kernel.

    pool_dtype=jnp.bfloat16 runs the pooling chain / fc4 in bf16 (v6e/v7x).
    """
    w1, b1, w2, b2, w3, b3, w4, b4, w5, b5 = params
    f32 = jnp.float32
    n = x.shape[0]

    # ---- one-time parameter prep (wrapper side, outside the kernel) ----
    # fc1/fc2/fc3 have no nonlinearity between them -> fuse into one linear map.
    w12 = w1 @ w2
    b12 = b1 @ w2 + b2
    w123 = w12 @ w3                              # [15, 120]
    b123 = b12 @ w3 + b3                         # [120]

    # Permute hidden units into 8 phase groups of 15 (16-sublane aligned):
    # kernel row 16p + t  <-  hidden unit 8t + p.  Padding rows/cols are zero,
    # so downstream maxes/matmuls are unaffected by them.
    p_idx = jnp.arange(8)
    t_idx = jnp.arange(15)
    krows = (16 * p_idx[:, None] + t_idx[None, :]).reshape(-1)
    hsrc = (8 * t_idx[None, :] + p_idx[:, None]).reshape(-1)
    w123T = jnp.zeros((128, 15), f32).at[krows].set(jnp.transpose(w123)[hsrc])
    b123T = jnp.zeros((128, 1), f32).at[krows, 0].set(b123[hsrc])

    # fc4: fold the avg-pool 0.5 into the weights; scatter output o to kernel
    # row o//2 (o even) or 8 + o//2 (o odd) so the last pool is a slice max.
    out_rows = jnp.array([0, 8, 1, 9, 2, 10, 3, 11])
    w4sc = jnp.zeros((16, 16), f32).at[out_rows, :15].set(0.5 * jnp.transpose(w4))
    b4sc = jnp.zeros((16, 1), f32).at[out_rows, 0].set(b4)

    # fc5 weights in row 0 of an 8x8 matrix (pooled values live in rows 0..3).
    w5p = jnp.zeros((8, 8), f32).at[0, :4].set(w5[:, 0])
    b5p = jnp.asarray(b5, f32).reshape(1, 1)

    # Optional reduced-precision pool chain (v6e/v7x).
    b123T = b123T.astype(pool_dtype)
    w4sc = w4sc.astype(pool_dtype)

    # ---- batch tiling (batch lives on the lane axis -> multiples of 128) ----
    n128 = _round_up(max(n, 1), 128)
    tile = _round_up(max(128, min(int(tile_n), n128)), 128)
    if n128 // tile < 2 and n128 >= 256:      # keep >=2 steps for v7x megacore
        tile = _round_up(n128 // 2, 128)
    n_pad = _round_up(n, tile)

    xp = jnp.pad(x.astype(f32), ((0, n_pad - n), (0, 0)))
    xT = jnp.transpose(xp)                    # [15, n_pad], one-time transpose

    const = lambda i: (0, 0)
    out = pl.pallas_call(
        network01_kernel,
        out_shape=jax.ShapeDtypeStruct((1, n_pad), f32),
        grid=(n_pad // tile,),
        in_specs=[
            pl.BlockSpec((15, tile), lambda i: (0, i)),   # x^T (pipelined)
            pl.BlockSpec((128, 15), const),               # fused fc1-3 weight
            pl.BlockSpec((128, 1), const),                # fused fc1-3 bias
            pl.BlockSpec((16, 16), const),                # fc4 weight (0.5 folded)
            pl.BlockSpec((16, 1), const),                 # fc4 bias
            pl.BlockSpec((8, 8), const),                  # fc5 weight
            pl.BlockSpec((1, 1), const),                  # fc5 bias
        ],
        out_specs=pl.BlockSpec((1, tile), lambda i: (0, i)),  # lane-dense row
        compiler_params=pltpu.CompilerParams(
            dimension_semantics=("parallel",),
            vmem_limit_bytes=32 * 1024 * 1024),
    )(xT, w123T, b123T, w4sc, b4sc, w5p, b5p)

    # PyTorch: x.squeeze().squeeze() on [1, N, 1] -> [N]; drop padded columns.
    return out[0, :n]


def network01_reference(x, params):
    """Plain-JAX replica of the PyTorch forward (for correctness check)."""
    w1, b1, w2, b2, w3, b3, w4, b4, w5, b5 = params
    n = x.shape[0]
    h = x @ w1 + b1
    h = h @ w2 + b2
    h = h @ w3 + b3
    h = jnp.max(jax.nn.relu(h).reshape(n, 60, 2), axis=-1)   # max_pool1d(2)
    h = jnp.max(jax.nn.relu(h).reshape(n, 30, 2), axis=-1)   # max_pool1d(2)
    h = jnp.mean(jax.nn.relu(h).reshape(n, 15, 2), axis=-1)  # avg_pool1d(2)
    h = h @ w4 + b4
    h = jnp.max(jax.nn.relu(h).reshape(n, 4, 2), axis=-1)    # max_pool1d(2)
    h = h @ w5 + b5
    h = jax.nn.relu(h)
    return jnp.squeeze(h, axis=-1)


if __name__ == "__main__":
    key = jax.random.PRNGKey(0)
    kp, kx = jax.random.split(key)
    params = make_params(kp)

    # Small demo batch, deliberately not a multiple of 128 to exercise padding.
    N = 300
    x = jax.random.normal(kx, (N, 15), jnp.float32)

    ref = network01_reference(x, params)

    # f32 path, default tiling (auto-shrinks here to a 2-step "parallel" grid).
    out = jax.block_until_ready(network01_pallas(x, params))
    assert out.shape == (N,), out.shape
    assert jnp.allclose(out, ref, atol=2e-5, rtol=2e-5)

    # bf16 pool-chain path (v6e/v7x oriented); small tile -> multi-step pipeline.
    out_bf16 = jax.block_until_ready(
        network01_pallas(x, params, tile_n=128, pool_dtype=jnp.bfloat16))
    assert out_bf16.shape == (N,)
    assert jnp.allclose(out_bf16, ref, atol=1e-1, rtol=1e-1)

    print("KERNEL_OK")
</pallas_src>

<mosaic_0001>
module attributes {stable_mosaic.version = 11 : i64} {
  func.func @network01_kernel(%arg0: i32, %arg1: memref<15x256xf32, #tpu.memory_space<vmem>>, %arg2: memref<128x15xf32, #tpu.memory_space<vmem>>, %arg3: memref<128x1xf32, #tpu.memory_space<vmem>>, %arg4: memref<16x16xf32, #tpu.memory_space<vmem>>, %arg5: memref<16x1xf32, #tpu.memory_space<vmem>>, %arg6: memref<8x8xf32, #tpu.memory_space<vmem>>, %arg7: memref<1x1xf32, #tpu.memory_space<vmem>>, %arg8: memref<1x256xf32, #tpu.memory_space<vmem>>) attributes {dimension_semantics = [#tpu.dimension_semantics<parallel>], iteration_bounds = array<i64: 2>, scalar_prefetch = 0 : i64, scratch_operands = 0 : i64, tpu.core_type = #tpu.core_type<tc>, window_params = [{transform_indices = @transform_0, window_bounds = array<i64: 15, 256>}, {pipeline_mode = #tpu.pipeline_mode<synchronous>, transform_indices = @transform_1, window_bounds = array<i64: 128, 15>}, {pipeline_mode = #tpu.pipeline_mode<synchronous>, transform_indices = @transform_2, window_bounds = array<i64: 128, 1>}, {pipeline_mode = #tpu.pipeline_mode<synchronous>, transform_indices = @transform_3, window_bounds = array<i64: 16, 16>}, {pipeline_mode = #tpu.pipeline_mode<synchronous>, transform_indices = @transform_4, window_bounds = array<i64: 16, 1>}, {pipeline_mode = #tpu.pipeline_mode<synchronous>, transform_indices = @transform_5, window_bounds = array<i64: 8, 8>}, {pipeline_mode = #tpu.pipeline_mode<synchronous>, transform_indices = @transform_6, window_bounds = array<i64: 1, 1>}, {transform_indices = @transform_7, window_bounds = array<i64: 1, 256>}]} {
    %c0 = arith.constant 0 : index
    %c0_0 = arith.constant 0 : index
    %0 = vector.load %arg2[%c0, %c0_0] : memref<128x15xf32, #tpu.memory_space<vmem>>, vector<128x15xf32>
    %c0_1 = arith.constant 0 : index
    %c0_2 = arith.constant 0 : index
    %1 = vector.load %arg1[%c0_1, %c0_2] : memref<15x256xf32, #tpu.memory_space<vmem>>, vector<15x256xf32>
    %cst = arith.constant dense<0.000000e+00> : vector<128x256xf32>
    %2 = tpu.matmul %0, %1, %cst {dimension_numbers = #tpu.dot_dimension_numbers<[1], [0], [0], [1], [0, 0, 1, 1], [], []>} : vector<128x15xf32>, vector<15x256xf32>, vector<128x256xf32> -> vector<128x256xf32>
    %c0_3 = arith.constant 0 : index
    %c0_4 = arith.constant 0 : index
    %3 = vector.load %arg3[%c0_3, %c0_4] : memref<128x1xf32, #tpu.memory_space<vmem>>, vector<128x1xf32>
    %4 = vector.broadcast %3 : vector<128x1xf32> to vector<128x256xf32>
    %5 = arith.addf %2, %4 : vector<128x256xf32>
    %cst_5 = arith.constant 0.000000e+00 : f32
    %6 = vector.broadcast %cst_5 : f32 to vector<128x256xf32>
    %7 = arith.maximumf %5, %6 : vector<128x256xf32>
    %8 = vector.extract_strided_slice %7 {offsets = [0, 0], sizes = [16, 256], strides = [1, 1]} : vector<128x256xf32> to vector<16x256xf32>
    %9 = vector.extract_strided_slice %7 {offsets = [16, 0], sizes = [16, 256], strides = [1, 1]} : vector<128x256xf32> to vector<16x256xf32>
    %10 = arith.maximumf %8, %9 : vector<16x256xf32>
    %11 = vector.extract_strided_slice %7 {offsets = [32, 0], sizes = [16, 256], strides = [1, 1]} : vector<128x256xf32> to vector<16x256xf32>
    %12 = vector.extract_strided_slice %7 {offsets = [48, 0], sizes = [16, 256], strides = [1, 1]} : vector<128x256xf32> to vector<16x256xf32>
    %13 = arith.maximumf %11, %12 : vector<16x256xf32>
    %14 = arith.maximumf %10, %13 : vector<16x256xf32>
    %15 = vector.extract_strided_slice %7 {offsets = [64, 0], sizes = [16, 256], strides = [1, 1]} : vector<128x256xf32> to vector<16x256xf32>
    %16 = vector.extract_strided_slice %7 {offsets = [80, 0], sizes = [16, 256], strides = [1, 1]} : vector<128x256xf32> to vector<16x256xf32>
    %17 = arith.maximumf %15, %16 : vector<16x256xf32>
    %18 = vector.extract_strided_slice %7 {offsets = [96, 0], sizes = [16, 256], strides = [1, 1]} : vector<128x256xf32> to vector<16x256xf32>
    %19 = vector.extract_strided_slice %7 {offsets = [112, 0], sizes = [16, 256], strides = [1, 1]} : vector<128x256xf32> to vector<16x256xf32>
    %20 = arith.maximumf %18, %19 : vector<16x256xf32>
    %21 = arith.maximumf %17, %20 : vector<16x256xf32>
    %22 = arith.addf %14, %21 : vector<16x256xf32>
    %c0_6 = arith.constant 0 : index
    %c0_7 = arith.constant 0 : index
    %23 = vector.load %arg4[%c0_6, %c0_7] : memref<16x16xf32, #tpu.memory_space<vmem>>, vector<16x16xf32>
    %cst_8 = arith.constant dense<0.000000e+00> : vector<16x256xf32>
    %24 = tpu.matmul %23, %22, %cst_8 {dimension_numbers = #tpu.dot_dimension_numbers<[1], [0], [0], [1], [0, 0, 1, 1], [], []>} : vector<16x16xf32>, vector<16x256xf32>, vector<16x256xf32> -> vector<16x256xf32>
    %c0_9 = arith.constant 0 : index
    %c0_10 = arith.constant 0 : index
    %25 = vector.load %arg5[%c0_9, %c0_10] : memref<16x1xf32, #tpu.memory_space<vmem>>, vector<16x1xf32>
    %26 = vector.broadcast %25 : vector<16x1xf32> to vector<16x256xf32>
    %27 = arith.addf %24, %26 : vector<16x256xf32>
    %cst_11 = arith.constant 0.000000e+00 : f32
    %28 = vector.broadcast %cst_11 : f32 to vector<16x256xf32>
    %29 = arith.maximumf %27, %28 : vector<16x256xf32>
    %30 = vector.extract_strided_slice %29 {offsets = [0, 0], sizes = [8, 256], strides = [1, 1]} : vector<16x256xf32> to vector<8x256xf32>
    %31 = vector.extract_strided_slice %29 {offsets = [8, 0], sizes = [8, 256], strides = [1, 1]} : vector<16x256xf32> to vector<8x256xf32>
    %32 = arith.maximumf %30, %31 : vector<8x256xf32>
    %c0_12 = arith.constant 0 : index
    %c0_13 = arith.constant 0 : index
    %33 = vector.load %arg6[%c0_12, %c0_13] : memref<8x8xf32, #tpu.memory_space<vmem>>, vector<8x8xf32>
    %cst_14 = arith.constant dense<0.000000e+00> : vector<8x256xf32>
    %34 = tpu.matmul %33, %32, %cst_14 {dimension_numbers = #tpu.dot_dimension_numbers<[1], [0], [0], [1], [0, 0, 1, 1], [], []>} : vector<8x8xf32>, vector<8x256xf32>, vector<8x256xf32> -> vector<8x256xf32>
    %35 = vector.extract_strided_slice %34 {offsets = [0, 0], sizes = [1, 256], strides = [1, 1]} : vector<8x256xf32> to vector<1x256xf32>
    %c0_15 = arith.constant 0 : index
    %c0_16 = arith.constant 0 : index
    %36 = vector.load %arg7[%c0_15, %c0_16] : memref<1x1xf32, #tpu.memory_space<vmem>>, vector<1x1xf32>
    %37 = vector.broadcast %36 : vector<1x1xf32> to vector<1x256xf32>
    %38 = arith.addf %35, %37 : vector<1x256xf32>
    %cst_17 = arith.constant 0.000000e+00 : f32
    %39 = vector.broadcast %cst_17 : f32 to vector<1x256xf32>
    %40 = arith.maximumf %38, %39 : vector<1x256xf32>
    %c0_18 = arith.constant 0 : index
    %c0_19 = arith.constant 0 : index
    %41 = vector.load %arg8[%c0_18, %c0_19] : memref<1x256xf32, #tpu.memory_space<vmem>>, vector<1x256xf32>
    tpu.vector_store %arg8[%c0_18, %c0_19], %40 {strides = array<i32>} : memref<1x256xf32, #tpu.memory_space<vmem>>, vector<1x256xf32>,
    return
  }
  func.func @transform_0(%arg0: i32) -> (i32, i32) {
    %c0_i32 = arith.constant 0 : i32
    %c0_i32_0 = arith.constant 0 : i32
    return %c0_i32, %arg0 : i32, i32
  }
  func.func @transform_1(%arg0: i32) -> (i32, i32) {
    %c0_i32 = arith.constant 0 : i32
    %c0_i32_0 = arith.constant 0 : i32
    %c0_i32_1 = arith.constant 0 : i32
    return %c0_i32, %c0_i32_0 : i32, i32
  }
  func.func @transform_2(%arg0: i32) -> (i32, i32) {
    %c0_i32 = arith.constant 0 : i32
    %c0_i32_0 = arith.constant 0 : i32
    %c0_i32_1 = arith.constant 0 : i32
    return %c0_i32, %c0_i32_0 : i32, i32
  }
  func.func @transform_3(%arg0: i32) -> (i32, i32) {
    %c0_i32 = arith.constant 0 : i32
    %c0_i32_0 = arith.constant 0 : i32
    %c0_i32_1 = arith.constant 0 : i32
    return %c0_i32, %c0_i32_0 : i32, i32
  }
  func.func @transform_4(%arg0: i32) -> (i32, i32) {
    %c0_i32 = arith.constant 0 : i32
    %c0_i32_0 = arith.constant 0 : i32
    %c0_i32_1 = arith.constant 0 : i32
    return %c0_i32, %c0_i32_0 : i32, i32
  }
  func.func @transform_5(%arg0: i32) -> (i32, i32) {
    %c0_i32 = arith.constant 0 : i32
    %c0_i32_0 = arith.constant 0 : i32
    %c0_i32_1 = arith.constant 0 : i32
    return %c0_i32, %c0_i32_0 : i32, i32
  }
  func.func @transform_6(%arg0: i32) -> (i32, i32) {
    %c0_i32 = arith.constant 0 : i32
    %c0_i32_0 = arith.constant 0 : i32
    %c0_i32_1 = arith.constant 0 : i32
    return %c0_i32, %c0_i32_0 : i32, i32
  }
  func.func @transform_7(%arg0: i32) -> (i32, i32) {
    %c0_i32 = arith.constant 0 : i32
    %c0_i32_0 = arith.constant 0 : i32
    return %c0_i32, %arg0 : i32, i32
  }
}

</mosaic_0001>

<bundles_post_ra>
// kernel: tpu_custom_call.1
= control target key start
LH: loop header
LB: loop body
LE: loop exit
PB: predicated region body
PF: predicated region fallthrough
CT: control target
= control target key end

     0   :  { %s1404_s0 = inlined_call_operand.vmem [shape: f32[15,512], index: 0, kind: input, shape index: {}]   ;;  %s1405_s1 = inlined_call_operand.vmem [shape: f32[128,15], index: 1, kind: input, shape index: {}]   ;;  %s1406_s2 = inlined_call_operand.vmem [shape: f32[128,1], index: 2, kind: input, shape index: {}]   ;;  %s1407_s3 = inlined_call_operand.vmem [shape: f32[16,16], index: 3, kind: input, shape index: {}]   ;;  %s1408_s4 = inlined_call_operand.vmem [shape: f32[16,1], index: 4, kind: input, shape index: {}]   ;;  %s1409_s5 = inlined_call_operand.vmem [shape: f32[8,8], index: 5, kind: input, shape index: {}]   ;;  %s1410_s6 = inlined_call_operand.<no memory space> [shape: f32[1,1], index: 6, kind: input, shape index: {}]   ;;  %s1411_s7 = inlined_call_operand.hbm [shape: f32[1,512], index: 7, kind: output, shape index: {}]  }
   0x1   :  { %v12_v0 = vstv %s1410_s6 }
   0x2   :  { %13 = vst [vmem:[#allocation2] sm:$0x1] %v12_v0 }
   0x3   :  { %14 = vsyncpa [#allocation5], 0 }
   0x4   :  { %16 = vsyncpa [#allocation5 + $0x1], 0  ;;  %s1099_s26 = smov 0   ;;  %s1101_s27 = smov 0  }
   0x5   :  { %s1103_s28 = smov 0   ;;  %s1105_s29 = smov 0  }
   0x6 LB: > { %s889_s6 = sadd.s32 4294967295, %s1053_s29   ;;  %s890_s30 = sadd.s32 4294967294, %s1053_s29   ;;  %s1053_s29 = sphi %s1105_s29, %s1417_s29   ;;  %s1049_s28 = sphi %s1103_s28, %s1416_s28   ;;  %s1045_s27 = sphi %s1101_s27, %s1415_s27   ;;  %s1041_s26 = sphi %s1099_s26, %s1414_s26  }
   0x7   : > { %s1122_s8 = sadd.s32 1, %s1053_s29   ;;  %s29_s9 = sadd.s32 1, %s1049_s28 }
   0x8   : > { %s26_s10 = ssub.s32 %s1053_s29, %s1122_s8  ;;  %p36_p0 = scmp.ne.s32.totalorder %s1049_s28, %s1045_s27 }
   0x9   : > { %p27_p1 = scmp.eq.s32.totalorder %s26_s10, 0  ;;  %p37_p2 = scmp.eq.s32.totalorder %s1053_s29, 0 }
   0xa   : > { %p192_p3 = scmp.eq.s32.totalorder %s889_s6, 1  ;;  %p197_p4 = scmp.ne.s32.totalorder %s1045_s27, %s1041_s26 }
   0xb   : > { %s1135_s11 = scalar_select %p27_p1, %s1049_s28, %s29_s9  }
   0xc   : > { %p38_p5 = por %p37_p2, %p36_p0  ;;  %p1137_p6 = por %p192_p3, %p36_p0 }
   0xd   : > { %p198_p7 = scmp.eq.s32.totalorder %s890_s30, 1  ;;  %p892_p9 = scmp.ge.s32.totalorder %s1053_s29, 2 }
   0xf   : > { %p1141_p8 = por %p198_p7, %p197_p4  ;;  %232 = sbr.rel (%p892_p9) target bundleno = 28 (0x1c), region = 40 }
  0x14   : > { %235 = sbr.rel (!%p38_p5) target bundleno = 28 (0x1c), region = 44  ;;  %s237_s14 = sand.u32 (%p38_p5), 1, %s1049_s28  }
  0x15   : > { %s943_s15 = sshll.u32 (%p38_p5), %s1053_s29, 4  ;;  %s893_s16 = sshll.u32 (%p38_p5), %s237_s14, 5 }
  0x16   : > { %s242_s19 = scalar_lea.vmem (%p38_p5), %s1404_s0, %s943_s15  ;;  %s239_s20 = scalar_lea.vmem (%p38_p5), [#allocation3], %s893_s16 }
  0x17   : > { %v255_v1 = vld [vmem:[%s242_s19] sm:$0xff] (%p38_p5)  ;;  %v257_v2 = vld [vmem:[%s242_s19 + $0x8] sm:$0xff] (%p38_p5) }
  0x18   : > { %v259_v3 = vld [vmem:[%s242_s19 + $0x20] sm:$0xff] (%p38_p5)  ;;  %256 = vst [vmem:[%s239_s20] sm:$0xff] (%p38_p5), %v255_v1  ;;  %v261_v4 = vld [vmem:[%s242_s19 + $0x28] sm:$0xff] (%p38_p5) }
  0x19   : > { %258 = vst [vmem:[%s239_s20 + $0x8] sm:$0xff] %v257_v2 }
  0x1a   : > { %260 = vst [vmem:[%s239_s20 + $0x10] sm:$0xff] %v259_v3 }
  0x1b   : > { %262 = vst [vmem:[%s239_s20 + $0x18] sm:$0xff] %v261_v4 }
  0x1c PF: > { %p896_p10 = scmp.ge.s32.totalorder %s1053_s29, 1  ;;  %p267_p11 = scmp.lt.s32.totalorder %s1053_s29, 3 }
  0x1e   : > { %p268_p12 = pnand %p896_p10, %p267_p11 }
  0x1f   : > { %s1156_s21 = sand.u32 (!%p268_p12), 1, %s1045_s27   ;;  %s940_s14 = sshll.u32 (!%p268_p12), %s889_s6, 1 }
  0x20   : > { %271 = sbr.rel (%p268_p12) target bundleno = 544 (0x220), region = 67  ;;  %s897_s24 = sshll.u32 (!%p268_p12), %s1156_s21, 5 }
  0x21   : > { %s276_s9 = scalar_lea.vmem (!%p268_p12), [#allocation3], %s897_s24  ;;  %s898_s10 = sshll.u32 (!%p268_p12), %s1156_s21, 1 }
  0x22   : > { %s820_s17 = scalar_lea.hbm (!%p268_p12), %s1411_s7, %s940_s14  ;;  %s304_s18 = scalar_lea.vmem (!%p268_p12), [#allocation4], %s898_s10 }
  0x23   : > { %s822_s19 = sshll.u32 (!%p268_p12), %s304_s18, 4  ;;  %s824_s20 = sshll.u32 (!%p268_p12), %s820_s17, 4  ;;  %s823_s19 = int_to_ptr.vmem [resolvable:$true] %s822_s19  ;;  %s825_s20 = int_to_ptr.hbm [resolvable:$true] %s824_s20 }
  0x24   : > { %s810_s6 = scalar_lea.sflag (!%p268_p12), [#allocation5], %s1156_s21  ;;  %s1005_s22 = sshra.s32 (!%p268_p12), %s825_s20, 4  ;;  %s1006_s22 = int_to_ptr.hbm [resolvable:$true] %s1005_s22 }
  0x25   : > { %v328_v5 = vld [vmem:[%s1406_s2 + $0x8] sm:$0xff]  ;;  %vm472_vm0 = vcmask 1046528   ;;  %v1055_v6 = vmov 0   ;;  %v325_v8 = vld [vmem:[%s276_s9 + $0x10] sm:$0x7f]  ;;  %v307_v12 = vld [vmem:[%s1405_s1] sm:$0xff]  ;;  %p1012_p2 = scmp.lt.s32.totalorder %s1006_s22, %s1411_s7 }
  0x26   : > { %988 = vset.pattern.permute.xlu0 %v1055_v6  ;;  %989 = vset.pattern.permute.xlu1 %v1055_v6  ;;  %v332_v7 = vld [vmem:[%s1406_s2 + $0x28] sm:$0xff]  ;;  %v326_v9 = vld [vmem:[%s276_s9 + $0x18] sm:$0x7f]  ;;  %vm423_vm1 = vcmask 121856   ;;  %v317_v13 = vld [vmem:[%s1405_s1 + $0x50] sm:$0xff]  ;;  %vm683_vm2 = vcmask 130048  }
  0x27   : > { %350 = vperm.xlu0 %988, %v328_v5   ;;  %370 = vperm.xlu1 %989, %v332_v7   ;;  %v323_v10 = vld [vmem:[%s276_s9] sm:$0xff]  ;;  %v324_v11 = vld [vmem:[%s276_s9 + $0x8] sm:$0xff]  ;;  %v330_v14 = vld [vmem:[%s1406_s2 + $0x18] sm:$0xff]  ;;  %vm743_vm3 = vcmask 64512   ;;  %vm801_vm4 = vcmask 1040384   ;;  %s1007_s23 = scalar_lea.hbm %s1006_s22, 2 }
  0x28   : > { %990 = vset.pattern.permute.xlu2 %v1055_v6  ;;  %899 = vmatpush.msk.msra.mxu0 %vm472_vm0, %v325_v8  ;;  %v336_v15 = vld [vmem:[%s1406_s2 + $0x48] sm:$0xff]  ;;  %v334_v16 = vld [vmem:[%s1406_s2 + $0x38] sm:$0xff]  ;;  %v309_v22 = vld [vmem:[%s1405_s1 + $0x10] sm:$0xff]  ;;  %p1008_p13 = scmp.ne.s32.totalorder %s1006_s22, %s1007_s23  ;;  %s1011_s30 = scalar_lea.hbm %s1411_s7, 4 }
  0x29   : > { %916 = vmatpush.msk.msra.mxu1 %vm472_vm0, %v326_v9  ;;  %944 = vmatpush.msk.msra.mxu2 %vm472_vm0, %v325_v8  ;;  %v308_v17 = vld [vmem:[%s1405_s1 + $0x8] sm:$0xff]  ;;  %v318_v18 = vld [vmem:[%s1405_s1 + $0x58] sm:$0xff]  ;;  %v319_v23 = vld [vmem:[%s1405_s1 + $0x60] sm:$0xff]  ;;  %p1013_p3 = scmp.lt.s32.totalorder %s1011_s30, %s1007_s23 }
  0x2a   : > { %946 = vmatpush.msk.msra.mxu3 %vm472_vm0, %v326_v9  ;;  %494 = vmatpush.msra.mxu0 %v323_v10  ;;  %v340_v19 = vld [vmem:[%s1406_s2 + $0x68] sm:$0xff]  ;;  %v338_v20 = vld [vmem:[%s1406_s2 + $0x58] sm:$0xff]  ;;  %v329_v24 = vld [vmem:[%s1406_s2 + $0x10] sm:$0xff]  ;;  %p1009_p0 = pnand %p1008_p13, %p1137_p6 }
  0x2b   : > { %559 = vmatpush.msra.mxu1 %v324_v11  ;;  %900 = vmatmul.msk.f32.vlgmr.msra.gmra.mxu0 %vm423_vm1, %v307_v12  ;;  %v342_v21 = vld [vmem:[%s1406_s2 + $0x78] sm:$0xff]  ;;  %v327_v25 = vld [vmem:[%s1406_s2] sm:$0xff]  ;;  %v320_v28 = vld [vmem:[%s1405_s1 + $0x68] sm:$0xff]  ;;  %p1014_p4 = por %p1013_p3, %p1012_p2 }
  0x2c   : > { %917 = vmatmul.msk.f32.vlgmr.msra.gmra.mxu1 %vm423_vm1, %v307_v12  ;;  %945 = vmatpush.msra.mxu2 %v323_v10  ;;  %v331_v26 = vld [vmem:[%s1406_s2 + $0x20] sm:$0xff]  ;;  %v310_v27 = vld [vmem:[%s1405_s1 + $0x18] sm:$0xff]  ;;  %v337_v30 = vld [vmem:[%s1406_s2 + $0x50] sm:$0xff]  ;;  %p1010_p1 = pneg %p1009_p0 }
  0x2d   : > { %947 = vmatpush.msra.mxu3 %v324_v11  ;;  %910 = vmatmul.msk.f32.vlgmr.msra.gmra.mxu2 %vm423_vm1, %v317_v13  ;;  %v335_v29 = vld [vmem:[%s1406_s2 + $0x40] sm:$0xff]  ;;  %v333_v32 = vld [vmem:[%s1406_s2 + $0x30] sm:$0xff]  ;;  %v312_v36 = vld [vmem:[%s1405_s1 + $0x28] sm:$0xff] }
  0x2e   : > { %927 = vmatmul.msk.f32.vlgmr.msra.gmra.mxu3 %vm423_vm1, %v317_v13  ;;  %390 = vperm.xlu2 %990, %v336_v15   ;;  %v311_v31 = vld [vmem:[%s1405_s1 + $0x20] sm:$0xff]  ;;  %v321_v33 = vld [vmem:[%s1405_s1 + $0x70] sm:$0xff]  ;;  %v322_v38 = vld [vmem:[%s1405_s1 + $0x78] sm:$0xff]  ;;  %p1015_p5 = pnand %p1014_p4, %p1010_p1 }
  0x2f   : > { %360 = vperm.xlu0 %988, %v330_v14   ;;  %380 = vperm.xlu1 %989, %v334_v16   ;;  %v341_v34 = vld [vmem:[%s1406_s2 + $0x70] sm:$0xff]  ;;  %v671_v35 = vld [vmem:[%s1408_s4] sm:$0xff]  ;;  %v672_v40 = vld [vmem:[%s1408_s4 + $0x8] sm:$0xff] }
  0x30   : > { %v339_v37 = vld [vmem:[%s1406_s2 + $0x60] sm:$0xff]  ;;  %v313_v41 = vld [vmem:[%s1405_s1 + $0x30] sm:$0xff]  ;;  %v314_v42 = vld [vmem:[%s1405_s1 + $0x38] sm:$0xff] }
  0x31   : > { %v787_v39 = vld [vmem:[#allocation2] sm:$0x1]  ;;  %v316_v44 = vld [vmem:[%s1405_s1 + $0x48] sm:$0xff] }
  0x32   : > { %v315_v43 = vld [vmem:[%s1405_s1 + $0x40] sm:$0xff] }
  0x33   : > { %901 = vmatmul.msk.f32.gmra.mxu0 %vm423_vm1, %v308_v17 }
  0x34   : > { %918 = vmatmul.msk.f32.gmra.mxu1 %vm423_vm1, %v308_v17 }
  0x35   : > { %911 = vmatmul.msk.f32.gmra.mxu2 %vm423_vm1, %v318_v18 }
  0x36   : > { %928 = vmatmul.msk.f32.gmra.mxu3 %vm423_vm1, %v318_v18  ;;  %400 = vperm.xlu2 %990, %v338_v20  }
  0x37   : > { %410 = vperm.xlu0 %988, %v340_v19   ;;  %420 = vperm.xlu1 %989, %v342_v21  }
  0x3b   : > { %902 = vmatmul.msk.f32.gmra.mxu0 %vm423_vm1, %v309_v22 }
  0x3c   : > { %919 = vmatmul.msk.f32.gmra.mxu1 %vm423_vm1, %v309_v22 }
  0x3d   : > { %912 = vmatmul.msk.f32.gmra.mxu2 %vm423_vm1, %v319_v23 }
  0x3e   : > { %929 = vmatmul.msk.f32.gmra.mxu3 %vm423_vm1, %v319_v23  ;;  %345 = vperm.xlu2 %990, %v327_v25  }
  0x3f   : > { %355 = vperm.xlu0 %988, %v329_v24   ;;  %365 = vperm.xlu1 %989, %v331_v26  }
  0x43   : > { %903 = vmatmul.msk.f32.gmra.mxu0 %vm423_vm1, %v310_v27 }
  0x44   : > { %920 = vmatmul.msk.f32.gmra.mxu1 %vm423_vm1, %v310_v27 }
  0x45   : > { %913 = vmatmul.msk.f32.gmra.mxu2 %vm423_vm1, %v320_v28 }
  0x46   : > { %930 = vmatmul.msk.f32.gmra.mxu3 %vm423_vm1, %v320_v28  ;;  %375 = vperm.xlu2 %990, %v333_v32  }
  0x47   : > { %385 = vperm.xlu0 %988, %v335_v29   ;;  %395 = vperm.xlu1 %989, %v337_v30  }
  0x4b   : > { %904 = vmatmul.msk.f32.gmra.mxu0 %vm423_vm1, %v311_v31 }
  0x4c   : > { %921 = vmatmul.msk.f32.gmra.mxu1 %vm423_vm1, %v311_v31 }
  0x4d   : > { %914 = vmatmul.msk.f32.gmra.mxu2 %vm423_vm1, %v321_v33 }
  0x4e   : > { %931 = vmatmul.msk.f32.gmra.mxu3 %vm423_vm1, %v321_v33  ;;  %405 = vperm.xlu2 %990, %v339_v37  }
  0x4f   : > { %415 = vperm.xlu0 %988, %v341_v34   ;;  %675 = vperm.xlu1 %989, %v671_v35  }
  0x53   : > { %905 = vmatmul.msk.f32.gmra.mxu0 %vm423_vm1, %v312_v36 }
  0x54   : > { %922 = vmatmul.msk.f32.gmra.mxu1 %vm423_vm1, %v312_v36 }
  0x55   : > { %915 = vmatmul.msk.f32.gmra.mxu2 %vm423_vm1, %v322_v38 }
  0x56   : > { %932 = vmatmul.msk.f32.gmra.mxu3 %vm423_vm1, %v322_v38  ;;  %680 = vperm.xlu2 %990, %v672_v40  }
  0x57   : > { %790 = vperm.xlu0 %988, %v787_v39  }
  0x5b   : > { %906 = vmatmul.msk.f32.gmra.mxu0 %vm423_vm1, %v313_v41 }
  0x5c   : > { %923 = vmatmul.msk.f32.gmra.mxu1 %vm423_vm1, %v313_v41 }
  0x63   : > { %907 = vmatmul.msk.f32.gmra.mxu0 %vm423_vm1, %v314_v42 }
  0x64   : > { %924 = vmatmul.msk.f32.gmra.mxu1 %vm423_vm1, %v314_v42 }
  0x6b   : > { %908 = vmatmul.msk.f32.gmra.mxu0 %vm423_vm1, %v315_v43 }
  0x6c   : > { %925 = vmatmul.msk.f32.gmra.mxu1 %vm423_vm1, %v315_v43 }
  0x73   : > { %909 = vmatmul.msk.f32.gmra.mxu0 %vm423_vm1, %v316_v44 }
  0x74   : > { %926 = vmatmul.msk.f32.gmra.mxu1 %vm423_vm1, %v316_v44 }
  0x88   : > { %v1299_v55 = vpop.permute.xlu2 %390 }
  0x90   : > { %v401_v62 = vpop.permute.xlu2 %400 }
  0x98   : > { %v346_v7 = vpop.permute.xlu2 %345 }
  0x99   : > { %v351_v53 = vpop.permute.xlu0 %350  ;;  %v1297_v54 = vpop.permute.xlu1 %370 }
  0xa0   : > { %v376_v14 = vpop.permute.xlu2 %375 }
  0xa1   : > { %v361_v60 = vpop.permute.xlu0 %360  ;;  %v381_v61 = vpop.permute.xlu1 %380 }
  0xa8   : > { %v496_v45 = vpop.f32.mrf.mxu0  ;;  %v406_v33 = vpop.permute.xlu2 %405 }
  0xa9   : > { %v561_v46 = vpop.f32.mrf.mxu1  ;;  %v1301_v3 = vpop.permute.xlu0 %410  ;;  %v1307_v23 = vadd.f32 %v496_v45, %v346_v7 }
  0xaa   : > { %v1303_v4 = vpop.permute.xlu1 %420  ;;  %v1309_v24 = vadd.f32 %v561_v46, %v346_v7 }
  0xab   : > { %v609_v37 = vmax.f32 %v1307_v23, 0.0 }
  0xac   : > { %v610_v38 = vmax.f32 %v1309_v24, 0.0  ;;  %v669_v24 = vld [vmem:[%s1407_s3] sm:$0xff] }
  0xb0   : > { %v499_v47 = vpop.f32.mrf.mxu0  ;;  %v526_v49 = vpop.f32.mrf.mxu2 }
  0xb1   : > { %v564_v48 = vpop.f32.mrf.mxu1  ;;  %v591_v50 = vpop.f32.mrf.mxu3  ;;  %v500_v25 = vadd.f32 %v499_v47, %v351_v53 }
  0xb2   : > { %v356_v10 = vpop.permute.xlu0 %355  ;;  %v366_v11 = vpop.permute.xlu1 %365  ;;  %v565_v26 = vadd.f32 %v564_v48, %v351_v53 }
  0xb3   : > { %v611_v40 = vmax.f32 %v500_v25, 0.0 }
  0xb4   : > { %v612_v41 = vmax.f32 %v565_v26, 0.0 }
  0xb8   : > { %v502_v51 = vpop.f32.mrf.mxu0  ;;  %v529_v58 = vpop.f32.mrf.mxu2 }
  0xb9   : > { %v567_v52 = vpop.f32.mrf.mxu1  ;;  %v594_v59 = vpop.f32.mrf.mxu3  ;;  %v1311_v27 = vadd.f32 %v502_v51, %v356_v10  ;;  %v1315_v29 = vadd.f32 %v529_v58, %v401_v62 }
  0xba   : > { %v396_v21 = vpop.permute.xlu1 %395  ;;  %v386_v22 = vpop.permute.xlu0 %385  ;;  %v1313_v28 = vadd.f32 %v567_v52, %v356_v10  ;;  %v1317_v30 = vadd.f32 %v594_v59, %v401_v62 }
  0xbb   : > { %v1319_v31 = vadd.f32 %v526_v49, %v396_v21  ;;  %v1321_v32 = vadd.f32 %v591_v50, %v396_v21  ;;  %v613_v42 = vmax.f32 %v1311_v27, 0.0  ;;  %v631_v44 = vmax.f32 %v1315_v29, 0.0 }
  0xbc   : > { %v614_v43 = vmax.f32 %v1313_v28, 0.0  ;;  %v632_v45 = vmax.f32 %v1317_v30, 0.0  ;;  %v670_v28 = vld [vmem:[%s1407_s3 + $0x8] sm:$0xff] }
  0xbd   : > { %v629_v46 = vmax.f32 %v1319_v31, 0.0  ;;  %v630_v47 = vmax.f32 %v1321_v32, 0.0 }
  0xc0   : > { %v505_v56 = vpop.f32.mrf.mxu0  ;;  %v532_v1 = vpop.f32.mrf.mxu2 }
  0xc1   : > { %v570_v57 = vpop.f32.mrf.mxu1  ;;  %v597_v2 = vpop.f32.mrf.mxu3  ;;  %v506_v19 = vadd.f32 %v505_v56, %v361_v60  ;;  %v1323_v36 = vadd.f32 %v532_v1, %v406_v33 }
  0xc2   : > { %v571_v20 = vadd.f32 %v570_v57, %v361_v60  ;;  %v1327_v39 = vadd.f32 %v597_v2, %v406_v33  ;;  %v416_v7 = vpop.permute.xlu0 %415 }
  0xc3   : > { %v615_v34 = vmax.f32 %v506_v19, 0.0  ;;  %v633_v53 = vmax.f32 %v1323_v36, 0.0 }
  0xc4   : > { %v616_v35 = vmax.f32 %v571_v20, 0.0  ;;  %v634_v57 = vmax.f32 %v1327_v39, 0.0 }
  0xc5   : > { %v1335_v50 = vmax.f32 %v611_v40, %v615_v34 }
  0xc6   : > { %v1337_v51 = vmax.f32 %v612_v41, %v616_v35 }
  0xc8   : > { %v508_v63 = vpop.f32.mrf.mxu0  ;;  %v535_v8 = vpop.f32.mrf.mxu2 }
  0xc9   : > { %v573_v0 = vpop.f32.mrf.mxu1  ;;  %v1305_v9 = vpop.f32.mrf.mxu3  ;;  %v509_v52 = vadd.f32 %v508_v63, %v366_v11 }
  0xca   : > { %v574_v56 = vadd.f32 %v573_v0, %v366_v11  ;;  %v536_v0 = vadd.f32 %v535_v8, %v1301_v3 }
  0xcb   : > { %v617_v26 = vmax.f32 %v509_v52, 0.0 }
  0xcc   : > { %v635_v34 = vmax.f32 %v536_v0, 0.0 }
  0xd0   : > { %v511_v5 = vpop.f32.mrf.mxu0  ;;  %v538_v15 = vpop.f32.mrf.mxu2 }
  0xd1   : > { %v576_v6 = vpop.f32.mrf.mxu1  ;;  %v603_v16 = vpop.f32.mrf.mxu3  ;;  %v512_v1 = vadd.f32 %v511_v5, %v1297_v54  ;;  %v539_v21 = vadd.f32 %v538_v15, %v416_v7  ;;  %v601_v5 = vadd.f32 %v1305_v9, %v1301_v3 }
  0xd2   : > { %v577_v2 = vadd.f32 %v576_v6, %v1297_v54  ;;  %v604_v63 = vadd.f32 %v603_v16, %v416_v7 }
  0xd3   : > { %v619_v6 = vmax.f32 %v512_v1, 0.0  ;;  %v636_v3 = vmax.f32 %v601_v5, 0.0 }
  0xd4   : > { %v620_v29 = vmax.f32 %v577_v2, 0.0  ;;  %v638_v16 = vmax.f32 %v604_v63, 0.0 }
  0xd8   : > { %v514_v12 = vpop.f32.mrf.mxu0  ;;  %v541_v59 = vpop.f32.mrf.mxu2 }
  0xd9   : > { %v579_v13 = vpop.f32.mrf.mxu1  ;;  %v606_v62 = vpop.f32.mrf.mxu3  ;;  %v515_v20 = vadd.f32 %v514_v12, %v376_v14  ;;  %v542_v11 = vadd.f32 %v541_v59, %v1303_v4 }
  0xda   : > { %v580_v25 = vadd.f32 %v579_v13, %v376_v14  ;;  %v637_v13 = vmax.f32 %v539_v21, 0.0 }
  0xdb   : > { %v621_v15 = vmax.f32 %v515_v20, 0.0  ;;  %v639_v31 = vmax.f32 %v542_v11, 0.0 }
  0xdc   : > { %v622_v14 = vmax.f32 %v580_v25, 0.0 }
  0xe0   : > { %v517_v17 = vpop.f32.mrf.mxu0 }
  0xe1   : > { %v582_v18 = vpop.f32.mrf.mxu1  ;;  %v518_v58 = vadd.f32 %v517_v17, %v381_v61  ;;  %v607_v17 = vadd.f32 %v606_v62, %v1303_v4 }
  0xe2   : > { %v583_v60 = vadd.f32 %v582_v18, %v381_v61  ;;  %v618_v61 = vmax.f32 %v574_v56, 0.0  ;;  %v658_v56 = vmax.f32 %v634_v57, %v638_v16 }
  0xe3   : > { %v623_v18 = vmax.f32 %v518_v58, 0.0  ;;  %v640_v32 = vmax.f32 %v607_v17, 0.0  ;;  %v659_v58 = vmax.f32 %v635_v34, %v639_v31 }
  0xe4   : > { %v624_v54 = vmax.f32 %v583_v60, 0.0  ;;  %v646_v52 = vmax.f32 %v618_v61, %v622_v14 }
  0xe5   : > { %v647_v9 = vmax.f32 %v619_v6, %v623_v18  ;;  %v660_v59 = vmax.f32 %v636_v3, %v640_v32  ;;  %v742_v18 = vld [vmem:[%s1409_s5] sm:$0xff] }
  0xe6   : > { %v648_v35 = vmax.f32 %v620_v29, %v624_v54  ;;  %v791_v54 = vpop.permute.xlu0 %790 }
  0xe7   : > { %v793_v6 = vperm.slane %v791_v54, 0 }
  0xe8   : > { %v520_v48 = vpop.f32.mrf.mxu0 }
  0xe9   : > { %v585_v49 = vpop.f32.mrf.mxu1  ;;  %v521_v10 = vadd.f32 %v520_v48, %v386_v22  ;;  %v645_v48 = vmax.f32 %v617_v26, %v621_v15 }
  0xea   : > { %v586_v19 = vadd.f32 %v585_v49, %v386_v22  ;;  %v657_v49 = vmax.f32 %v633_v53, %v637_v13  ;;  %v652_v53 = vmax.f32 %v1337_v51, %v648_v35  ;;  %v804_v13 = vlaneseq }
  0xeb   : > { %v625_v22 = vmax.f32 %v521_v10, 0.0 }
  0xec   : > { %v626_v12 = vmax.f32 %v586_v19, 0.0  ;;  %vm806_vm5 = vcmp.lt.s32.totalorder %v804_v13, 256 }
  0xed   : > { %v653_v36 = vmax.f32 %v625_v22, %v629_v46  ;;  %v642_v46 = vmax.f32 %v610_v38, %v614_v43  ;;  %v676_v43 = vpop.permute.xlu1 %675 }
  0xee   : > { %v654_v39 = vmax.f32 %v626_v12, %v630_v47  ;;  %v651_v47 = vmax.f32 %v1335_v50, %v647_v9  ;;  %v681_v50 = vpop.permute.xlu2 %680 }
  0xef   : > { %v661_v2 = vmax.f32 %v653_v36, %v657_v49  ;;  %v650_v27 = vmax.f32 %v642_v46, %v646_v52 }
  0xf0   : > { %v523_v30 = vpop.f32.mrf.mxu0  ;;  %v662_v7 = vmax.f32 %v654_v39, %v658_v56 }
  0xf1   : > { %v588_v8 = vpop.f32.mrf.mxu1  ;;  %v524_v4 = vadd.f32 %v523_v30, %v1299_v55 }
  0xf2   : > { %v589_v33 = vadd.f32 %v588_v8, %v1299_v55  ;;  %v641_v55 = vmax.f32 %v609_v37, %v613_v42  ;;  %v666_v37 = vadd.f32 %v662_v7, %v650_v27 }
  0xf3   : > { %v627_v40 = vmax.f32 %v524_v4, 0.0 }
  0xf4   : > { %v628_v41 = vmax.f32 %v589_v33, 0.0  ;;  %v649_v10 = vmax.f32 %v641_v55, %v645_v48 }
  0xf5   : > { %v655_v60 = vmax.f32 %v627_v40, %v631_v44 }
  0xf6   : > { %v656_v62 = vmax.f32 %v628_v41, %v632_v45  ;;  %v665_v23 = vadd.f32 %v661_v2, %v649_v10 }
  0xf7   : > { %v663_v1 = vmax.f32 %v655_v60, %v659_v58 }
  0xf8   : > { %v664_v57 = vmax.f32 %v656_v62, %v660_v59 }
  0xf9   : > { %v667_v44 = vadd.f32 %v663_v1, %v651_v47 }
  0xfa   : > { %v668_v45 = vadd.f32 %v664_v57, %v652_v53 }
  0xfb   : > { %704 = vmatpush.msrb.mxu2 %v667_v44 }
  0xfc   : > { %727 = vmatpush.msrb.mxu3 %v668_v45 }
  0xfd   : > { %705 = vmatpush.msrb.mxu2 %v665_v23 }
  0xfe   : > { %728 = vmatpush.msrb.mxu3 %v666_v37  ;;  %933 = vmatmul.msk.f32.vlgmr.msrb.gmra.mxu2 %vm683_vm2, %v669_v24 }
  0xff   : > { %935 = vmatmul.msk.f32.vlgmr.msrb.gmra.mxu3 %vm683_vm2, %v669_v24 }
 0x106   : > { %934 = vmatmul.msk.f32.gmra.mxu2 %vm683_vm2, %v670_v28 }
 0x107   : > { %936 = vmatmul.msk.f32.gmra.mxu3 %vm683_vm2, %v670_v28 }
 0x181   : > { %v707_v38 = vpop.f32.mrf.mxu2 }
 0x182   : > { %v730_v42 = vpop.f32.mrf.mxu3  ;;  %v708_v51 = vadd.f32 %v707_v38, %v676_v43 }
 0x183   : > { %v731_v19 = vadd.f32 %v730_v42, %v676_v43 }
 0x184   : > { %v736_v26 = vmax.f32 %v708_v51, 0.0 }
 0x185   : > { %v737_v0 = vmax.f32 %v731_v19, 0.0 }
 0x189   : > { %v710_v20 = vpop.f32.mrf.mxu2 }
 0x18a   : > { %v733_v21 = vpop.f32.mrf.mxu3  ;;  %v711_v25 = vadd.f32 %v710_v20, %v681_v50 }
 0x18b   : > { %v734_v63 = vadd.f32 %v733_v21, %v681_v50 }
 0x18c   : > { %v738_v11 = vmax.f32 %v711_v25, 0.0 }
 0x18d   : > { %v739_v17 = vmax.f32 %v734_v63, 0.0 }
 0x18e   : > { %v740_v61 = vmax.f32 %v736_v26, %v738_v11 }
 0x18f   : > { %v741_v5 = vmax.f32 %v737_v0, %v739_v17 }
 0x190   : > { %762 = vmatpush.msra.mxu2 %v740_v61 }
 0x191   : > { %782 = vmatpush.msra.mxu3 %v741_v5  ;;  %937 = vmatmul.msk.f32.vlgmr.msra.gmra.mxu2 %vm743_vm3, %v742_v18 }
 0x192   : > { %938 = vmatmul.msk.f32.vlgmr.msra.gmra.mxu3 %vm743_vm3, %v742_v18 }
 0x214   : > { %v764_v29 = vpop.f32.mrf.mxu2 }
 0x215   : > { %v784_v22 = vpop.f32.mrf.mxu3  ;;  %v794_v12 = vadd.f32 %v793_v6, %v764_v29 }
 0x216   : > { %v795_v15 = vadd.f32 %v793_v6, %v784_v22 }
 0x217   : > { %v796_v16 = vmax.f32 %v794_v12, 0.0 }
 0x218   : > { %v797_v14 = vmax.f32 %v795_v15, 0.0 }
 0x21a   : > { %v800_v30 = vrot.slane %v797_v14, 7 }
 0x21c   : > { %v802_v8 = vsel %vm801_vm4, %v796_v16, %v800_v30 }
 0x21d   : > { %808 = vst.msk [vmem:[%s304_s18] sm:$0x3] %vm806_vm5, %v802_v8 }
 0x21e   : > { %1018 = shalt.err (!%p1015_p5)
}
 0x21f   : > { %948 = dma.vmem_to_hbm [thread:$0]  (%p1137_p6), %s823_s19, 32, %s825_s20, %s810_s6  }
 0x220 PF: > { %s836_s21 = sand.u32 1, %s1041_s26   ;;  %p951_p7 = pnand %p892_p9, %p1141_p8 }
 0x221   : > { %s837_s14 = scalar_lea.sflag [#allocation5], %s836_s21 }
 0x222   : > { %p952_p10 = pneg %p951_p7 }
 0x224   : > { %1036 = dma.done.wait (%p952_p10), %s837_s14, 32  }
 0x225   : > { %1038 = vsyncadd (%p952_p10), %s837_s14, 4294967264  ;;  %p19_p11 = scmp.ge.s32.totalorder %s1122_s8, 4   ;;  %s1414_s26 = smov %s1045_s27 }
 0x226   : > { %s1415_s27 = smov %s1049_s28  ;;  %s1416_s28 = smov %s1135_s11 }
 0x227   : > { %s1417_s29 = smov %s1122_s8  ;;  %21 = sbr.rel (!%p19_p11) target bundleno = 6 (0x6), region = 111 }
 0x22c   :  { %843 = vsyncpa [#allocation5], 1 }
 0x22d   :  { %845 = vsyncpa [#allocation5 + $0x1], 1 }

</bundles_post_ra>
